<compile_context>
chip_gen: v5e
topology: v5e:2x2
jax: 0.10.0
libtpu: 0.0.40
codegen_flags: <defaults>
</compile_context>

<pallas_src>
import jax
import jax.numpy as jnp
from jax.experimental import pallas as pl
from jax.experimental.pallas import tpu as pltpu

N_POINTS = 8            # samples per ray
FEAT = N_POINTS * 3     # LazyLinear in_features after flatten (=24)
DIM = 32                # MLP hidden width
N_LAYERS = 2            # number of (ReLU, LayerNorm, Linear) blocks
LN_EPS = 1e-5           # PyTorch LayerNorm default eps
BIG = 1e9               # "infinite" distance sentinel
IN_ROWS = 8             # kernel input rows: orig(3) + vec(3) + ones(1) + pad(1)


def _round_up(x, m):
    return ((x + m - 1) // m) * m


# ----------------------------- Pallas kernel -------------------------------
def mlpnet_kernel(x_ref, len_ref, w0_ref, ws_ref, bs_ref, wh_ref, bh_ref,
                  out_ref):
    """MLPNet.forward for one tile of rays, feature-major layout.

    x_ref   : [8, bn]  f32   rows 0-2 = orig+vec*t1, rows 3-5 = vec*(t2-t1),
                             row 6 = 1.0 (bias/const row), row 7 = 0 (pad).
    len_ref : [1, bn]  f32   segment lengths.
    w0_ref  : [DIM, 8] f32   featurization + box-norm + layer-0 bias folded in.
    ws_ref  : [L, DIM, DIM] bf16  (LayerNorm gamma folded in)
    bs_ref  : [L, DIM, 1]   f32   (LayerNorm beta folded in)
    wh_ref  : [2, DIM] bf16  fused cls/dist heads.
    bh_ref  : [2, 1]   f32
    out_ref : [2, bn]  f32   row 0 = cls logits, row 1 = dist * lengths.
    """
    # layer 0 (featurization + LazyLinear fused into one tiny-K matmul)
    y = jnp.dot(w0_ref[...], x_ref[...],
                preferred_element_type=jnp.float32)            # [DIM, bn] f32

    for l in range(N_LAYERS):                                  # static unroll
        r = jnp.maximum(y, 0.0)                                # ReLU
        mean = jnp.mean(r, axis=0, keepdims=True)              # LN over DIM
        d = r - mean
        var = jnp.mean(d * d, axis=0, keepdims=True)
        # emit the normalized activation directly as bf16 (affine is folded
        # into ws/bs, so no gamma/beta VPU passes here)
        n_bf = (d * jax.lax.rsqrt(var + LN_EPS)).astype(jnp.bfloat16)
        y = jnp.dot(ws_ref[l], n_bf,
                    preferred_element_type=jnp.float32) + bs_ref[l]

    r = jnp.maximum(y, 0.0).astype(jnp.bfloat16)               # final ReLU

    # fused heads: one [2, DIM] @ [DIM, bn] matmul
    heads = jnp.dot(wh_ref[...], r,
                    preferred_element_type=jnp.float32) + bh_ref[...]  # [2, bn]

    # two direct lane-dense row stores (no ones broadcast / concat / mul-by-1)
    out_ref[0:1, :] = heads[0:1, :]
    out_ref[1:2, :] = heads[1:2, :] * len_ref[...]


def mlpnet_forward(x8, len_row, params, *, block_n):
    """Runs the Pallas kernel over a 1-D grid of ray tiles.

    x8:      [8, total_pad] f32  (rays on the lane axis)
    len_row: [1, total_pad] f32
    returns: [2, total_pad] f32 — row 0 = cls logits, row 1 = dist * lengths
    """
    rows, total_pad = x8.shape
    assert rows == IN_ROWS
    assert block_n % 128 == 0 and total_pad % block_n == 0

    def full_spec(arr):
        zeros = (0,) * arr.ndim
        return pl.BlockSpec(arr.shape, lambda i, z=zeros: z)

    in_specs = [pl.BlockSpec((IN_ROWS, block_n), lambda i: (0, i)),
                pl.BlockSpec((1, block_n), lambda i: (0, i))]
    in_specs += [full_spec(p) for p in params]
    out_specs = pl.BlockSpec((2, block_n), lambda i: (0, i))
    out_shape = jax.ShapeDtypeStruct((2, total_pad), jnp.float32)

    return pl.pallas_call(
        mlpnet_kernel,
        grid=(total_pad // block_n,),
        in_specs=in_specs,
        out_specs=out_specs,
        out_shape=out_shape,
        compiler_params=pltpu.CompilerParams(
            dimension_semantics=("parallel",),
            vmem_limit_bytes=32 * 1024 * 1024),
    )(x8, len_row, *params)


# ------------------------------- parameters --------------------------------
def init_params(key):
    """Raw PyTorch-equivalent parameters (Linear / LayerNorm shapes)."""
    ks = jax.random.split(key, 3 + N_LAYERS)

    def lin(k, fan_in, fan_out):
        bound = 1.0 / jnp.sqrt(jnp.float32(fan_in))
        kw, kb = jax.random.split(k)
        w = jax.random.uniform(kw, (fan_out, fan_in), jnp.float32, -bound, bound)
        b = jax.random.uniform(kb, (fan_out,), jnp.float32, -bound, bound)
        return w, b

    w0, b0 = lin(ks[0], FEAT, DIM)                     # LazyLinear(dim)
    ws, bs = [], []
    for l in range(N_LAYERS):                          # Linear(dim, dim) stack
        w, b = lin(ks[1 + l], DIM, DIM)
        ws.append(w)
        bs.append(b)
    ws = jnp.stack(ws)                                 # [L, DIM, DIM]
    bs = jnp.stack(bs)                                 # [L, DIM]
    gammas = jnp.ones((N_LAYERS, DIM), jnp.float32)    # LayerNorm weight
    betas = jnp.zeros((N_LAYERS, DIM), jnp.float32)    # LayerNorm bias
    wc, bc = lin(ks[1 + N_LAYERS], DIM, 1)             # cls head  [1, DIM]
    wd, bd = lin(ks[2 + N_LAYERS], DIM, 1)             # dist head [1, DIM]
    return dict(w0=w0, b0=b0, gammas=gammas, betas=betas, ws=ws, bs=bs,
                wc=wc, bc=bc, wd=wd, bd=bd)


def prepare_params(raw, mesh_min, mesh_max):
    """Folds featurization, box normalization, layer-0 bias and the LayerNorm
    affine into the weight matrices consumed by the kernel."""
    min_infl = mesh_min - 0.5 * (mesh_max - mesh_min)
    max_infl = mesh_max + 0.5 * (mesh_max - mesh_min)
    inv_range = 1.0 / (max_infl - min_infl)                       # [3]
    ts = jnp.linspace(0.0, 1.0, N_POINTS, dtype=jnp.float32)      # [P]

    # feat[p*3+c] = inv_range[c]*orig[c] + ts[p]*inv_range[c]*vec[c]
    #               - min_infl[c]*inv_range[c] * 1
    d3 = jnp.diag(inv_range)                                      # [3, 3]
    const_col = (-min_infl * inv_range)[:, None]                  # [3, 1]
    blocks = [jnp.concatenate([d3, ts[p] * d3, const_col], axis=1)
              for p in range(N_POINTS)]
    A = jnp.concatenate(blocks, axis=0)                           # [FEAT, 7]

    w0a = raw["w0"] @ A                                           # [DIM, 7]
    w0_eff = jnp.zeros((DIM, IN_ROWS), jnp.float32)
    w0_eff = w0_eff.at[:, :7].set(w0a)
    w0_eff = w0_eff.at[:, 6].add(raw["b0"])   # bias rides the constant-1 row

    # LayerNorm affine folded into the following Linear:
    #   W' = W·diag(gamma),  b' = W·beta + b
    ws_eff = raw["ws"] * raw["gammas"][:, None, :]                # [L, DIM, DIM]
    bs_eff = jnp.einsum("lij,lj->li", raw["ws"], raw["betas"]) + raw["bs"]

    wh = jnp.concatenate([raw["wc"], raw["wd"]], axis=0)          # [2, DIM]
    bh = jnp.concatenate([raw["bc"], raw["bd"]], axis=0)[:, None]  # [2, 1]

    return (w0_eff,
            ws_eff.astype(jnp.bfloat16), bs_eff[:, :, None],
            wh.astype(jnp.bfloat16), bh)


# --------------------------- NBVHModel.forward -----------------------------
def nbvh_forward(orig, vec, kernel_params, traversal_steps,
                 initial=False, block_n=8192):
    """NBVHModel.forward.  The BVH traversal (`bvh.another_bbox_nbvh`) is an
    external CUDA structure; it is replaced by a pre-computed list of
    (cur_mask, t1, t2) steps.  All steps' MLP work runs in a single
    pallas_call; the masked dist merge runs in plain JAX afterwards.
    Mesh bounds / box normalization are already folded into kernel_params."""
    n = orig.shape[0]
    n_steps = len(traversal_steps)
    total = n_steps * n

    if initial:
        # MLPNet fills cls=100, dist=0 in this mode — skip the kernel entirely.
        cls_steps = jnp.full((n_steps, n), 100.0, jnp.float32)
        dist_steps = jnp.zeros((n_steps, n), jnp.float32)
    else:
        block_n = max(128, min(block_n, _round_up(total, 128)))
        grid_n = pl.cdiv(total, block_n)
        total_pad = grid_n * block_n

        o_list, v_list, len_list = [], [], []
        for cur_mask, t1, t2 in traversal_steps:
            inp_orig = orig + vec * t1[:, None]                   # [N, 3]
            inp_vec = vec * (t2 - t1)[:, None]                    # [N, 3]
            o_list.append(inp_orig)
            v_list.append(inp_vec)
            len_list.append(jnp.linalg.norm(inp_vec, axis=-1))    # [N]

        o_all = jnp.concatenate(o_list, axis=0)                   # [total, 3]
        v_all = jnp.concatenate(v_list, axis=0)                   # [total, 3]
        len_all = jnp.concatenate(len_list, axis=0)               # [total]

        # Kernel input slab: [8, total_pad] f32 — featurization (8 samples),
        # box normalization and layer-0 bias are all folded into w0_eff.
        cols = jnp.concatenate(
            [o_all, v_all,
             jnp.ones((total, 1), jnp.float32),
             jnp.zeros((total, 1), jnp.float32)], axis=1)          # [total, 8]
        x8 = jnp.zeros((IN_ROWS, total_pad), jnp.float32)
        x8 = x8.at[:, :total].set(cols.T)
        len_row = jnp.zeros((1, total_pad), jnp.float32)
        len_row = len_row.at[0, :total].set(len_all)

        out = mlpnet_forward(x8, len_row, kernel_params, block_n=block_n)
        cls_steps = out[0, :total].reshape(n_steps, n)
        dist_steps = out[1, :total].reshape(n_steps, n)            # dist*length

    dist = jnp.full((n,), BIG, dtype=jnp.float32)
    for s, (cur_mask, t1, t2) in enumerate(traversal_steps):
        hit = jnp.where(cur_mask, cls_steps[s], 0.0)
        dist_val = jnp.where(cur_mask, dist_steps[s], 0.0) + t1
        update = (hit > 0) & (dist_val < dist) & cur_mask
        dist = jnp.where(update, dist_val, dist)

    dist = jnp.where(dist == BIG, 0.0, dist)
    return dist > 0, dist


# ----------------------------------- main -----------------------------------
if __name__ == "__main__":
    key = jax.random.PRNGKey(0)
    kp, ko, kv, kt = jax.random.split(key, 4)

    raw_params = init_params(kp)

    # TODO(synk): Mesh(cfg.mesh.path) file load has no in-script equivalent;
    # use synthetic axis-aligned mesh bounds.
    mesh_min = jnp.array([-1.0, -1.0, -1.0], jnp.float32)
    mesh_max = jnp.array([1.0, 1.0, 1.0], jnp.float32)
    kernel_params = prepare_params(raw_params, mesh_min, mesh_max)

    n_rays = 16
    orig = jax.random.normal(ko, (n_rays, 3), jnp.float32)
    vec = jax.random.normal(kv, (n_rays, 3), jnp.float32)

    # TODO(synk): self.bvh.another_bbox_nbvh (external CUDA BVH traversal) has
    # no Pallas equivalent; synthesize two deterministic traversal steps.
    steps = []
    k = kt
    for _ in range(2):
        k, k1, k2, k3 = jax.random.split(k, 4)
        t1 = jax.random.uniform(k1, (n_rays,), jnp.float32, 0.0, 0.5)
        t2 = t1 + jax.random.uniform(k2, (n_rays,), jnp.float32, 0.1, 1.0)
        cur_mask = jax.random.uniform(k3, (n_rays,)) > 0.25
        steps.append((cur_mask, t1, t2))

    hit, dist = nbvh_forward(orig, vec, kernel_params, steps, block_n=8192)
    jax.block_until_ready((hit, dist))
    print("KERNEL_OK")
</pallas_src>

<mosaic_0001>
module attributes {stable_mosaic.version = 11 : i64} {
  func.func @mlpnet_kernel(%arg0: i32, %arg1: memref<8x128xf32, #tpu.memory_space<vmem>>, %arg2: memref<1x128xf32, #tpu.memory_space<vmem>>, %arg3: memref<32x8xf32, #tpu.memory_space<vmem>>, %arg4: memref<2x32x32xbf16, #tpu.memory_space<vmem>>, %arg5: memref<2x32x1xf32, #tpu.memory_space<vmem>>, %arg6: memref<2x32xbf16, #tpu.memory_space<vmem>>, %arg7: memref<2x1xf32, #tpu.memory_space<vmem>>, %arg8: memref<2x128xf32, #tpu.memory_space<vmem>>) attributes {dimension_semantics = [#tpu.dimension_semantics<parallel>], iteration_bounds = array<i64: 1>, scalar_prefetch = 0 : i64, scratch_operands = 0 : i64, tpu.core_type = #tpu.core_type<tc>, window_params = [{transform_indices = @transform_0, window_bounds = array<i64: 8, 128>}, {transform_indices = @transform_1, window_bounds = array<i64: 1, 128>}, {pipeline_mode = #tpu.pipeline_mode<synchronous>, transform_indices = @transform_2, window_bounds = array<i64: 32, 8>}, {pipeline_mode = #tpu.pipeline_mode<synchronous>, transform_indices = @transform_3, window_bounds = array<i64: 2, 32, 32>}, {pipeline_mode = #tpu.pipeline_mode<synchronous>, transform_indices = @transform_4, window_bounds = array<i64: 2, 32, 1>}, {pipeline_mode = #tpu.pipeline_mode<synchronous>, transform_indices = @transform_5, window_bounds = array<i64: 2, 32>}, {pipeline_mode = #tpu.pipeline_mode<synchronous>, transform_indices = @transform_6, window_bounds = array<i64: 2, 1>}, {transform_indices = @transform_7, window_bounds = array<i64: 2, 128>}]} {
    %c0 = arith.constant 0 : index
    %c0_0 = arith.constant 0 : index
    %0 = vector.load %arg3[%c0, %c0_0] : memref<32x8xf32, #tpu.memory_space<vmem>>, vector<32x8xf32>
    %c0_1 = arith.constant 0 : index
    %c0_2 = arith.constant 0 : index
    %1 = vector.load %arg1[%c0_1, %c0_2] : memref<8x128xf32, #tpu.memory_space<vmem>>, vector<8x128xf32>
    %cst = arith.constant dense<0.000000e+00> : vector<32x128xf32>
    %2 = tpu.matmul %0, %1, %cst {dimension_numbers = #tpu.dot_dimension_numbers<[1], [0], [0], [1], [0, 0, 1, 1], [], []>} : vector<32x8xf32>, vector<8x128xf32>, vector<32x128xf32> -> vector<32x128xf32>
    %cst_3 = arith.constant 0.000000e+00 : f32
    %3 = vector.broadcast %cst_3 : f32 to vector<32x128xf32>
    %4 = arith.maximumf %2, %3 : vector<32x128xf32>
    %cst_4 = arith.constant dense<0.000000e+00> : vector<128xf32>
    %5 = vector.multi_reduction <add>, %4, %cst_4 [0] : vector<32x128xf32> to vector<128xf32>
    %6 = vector.shape_cast %5 : vector<128xf32> to vector<1x128xf32>
    %cst_5 = arith.constant 3.200000e+01 : f32
    %7 = vector.broadcast %cst_5 : f32 to vector<1x128xf32>
    %8 = arith.divf %6, %7 : vector<1x128xf32>
    %9 = vector.broadcast %8 : vector<1x128xf32> to vector<32x128xf32>
    %10 = arith.subf %4, %9 : vector<32x128xf32>
    %11 = arith.mulf %10, %10 : vector<32x128xf32>
    %cst_6 = arith.constant dense<0.000000e+00> : vector<128xf32>
    %12 = vector.multi_reduction <add>, %11, %cst_6 [0] : vector<32x128xf32> to vector<128xf32>
    %13 = vector.shape_cast %12 : vector<128xf32> to vector<1x128xf32>
    %cst_7 = arith.constant 3.200000e+01 : f32
    %14 = vector.broadcast %cst_7 : f32 to vector<1x128xf32>
    %15 = arith.divf %13, %14 : vector<1x128xf32>
    %cst_8 = arith.constant 9.99999974E-6 : f32
    %16 = vector.broadcast %cst_8 : f32 to vector<1x128xf32>
    %17 = arith.addf %15, %16 : vector<1x128xf32>
    %18 = math.rsqrt %17 : vector<1x128xf32>
    %19 = vector.broadcast %18 : vector<1x128xf32> to vector<32x128xf32>
    %20 = arith.mulf %10, %19 : vector<32x128xf32>
    %21 = arith.truncf %20 : vector<32x128xf32> to vector<32x128xbf16>
    %c0_9 = arith.constant 0 : index
    %c0_10 = arith.constant 0 : index
    %c0_11 = arith.constant 0 : index
    %22 = vector.load %arg4[%c0_9, %c0_10, %c0_11] : memref<2x32x32xbf16, #tpu.memory_space<vmem>>, vector<1x32x32xbf16>
    %23 = vector.shape_cast %22 : vector<1x32x32xbf16> to vector<32x32xbf16>
    %cst_12 = arith.constant dense<0.000000e+00> : vector<32x128xf32>
    %24 = tpu.matmul %23, %21, %cst_12 {dimension_numbers = #tpu.dot_dimension_numbers<[1], [0], [0], [1], [0, 0, 1, 1], [], []>} : vector<32x32xbf16>, vector<32x128xbf16>, vector<32x128xf32> -> vector<32x128xf32>
    %c0_13 = arith.constant 0 : index
    %c0_14 = arith.constant 0 : index
    %c0_15 = arith.constant 0 : index
    %25 = vector.load %arg5[%c0_13, %c0_14, %c0_15] : memref<2x32x1xf32, #tpu.memory_space<vmem>>, vector<1x32x1xf32>
    %26 = vector.shape_cast %25 : vector<1x32x1xf32> to vector<32x1xf32>
    %27 = vector.broadcast %26 : vector<32x1xf32> to vector<32x128xf32>
    %28 = arith.addf %24, %27 : vector<32x128xf32>
    %cst_16 = arith.constant 0.000000e+00 : f32
    %29 = vector.broadcast %cst_16 : f32 to vector<32x128xf32>
    %30 = arith.maximumf %28, %29 : vector<32x128xf32>
    %cst_17 = arith.constant dense<0.000000e+00> : vector<128xf32>
    %31 = vector.multi_reduction <add>, %30, %cst_17 [0] : vector<32x128xf32> to vector<128xf32>
    %32 = vector.shape_cast %31 : vector<128xf32> to vector<1x128xf32>
    %cst_18 = arith.constant 3.200000e+01 : f32
    %33 = vector.broadcast %cst_18 : f32 to vector<1x128xf32>
    %34 = arith.divf %32, %33 : vector<1x128xf32>
    %35 = vector.broadcast %34 : vector<1x128xf32> to vector<32x128xf32>
    %36 = arith.subf %30, %35 : vector<32x128xf32>
    %37 = arith.mulf %36, %36 : vector<32x128xf32>
    %cst_19 = arith.constant dense<0.000000e+00> : vector<128xf32>
    %38 = vector.multi_reduction <add>, %37, %cst_19 [0] : vector<32x128xf32> to vector<128xf32>
    %39 = vector.shape_cast %38 : vector<128xf32> to vector<1x128xf32>
    %cst_20 = arith.constant 3.200000e+01 : f32
    %40 = vector.broadcast %cst_20 : f32 to vector<1x128xf32>
    %41 = arith.divf %39, %40 : vector<1x128xf32>
    %cst_21 = arith.constant 9.99999974E-6 : f32
    %42 = vector.broadcast %cst_21 : f32 to vector<1x128xf32>
    %43 = arith.addf %41, %42 : vector<1x128xf32>
    %44 = math.rsqrt %43 : vector<1x128xf32>
    %45 = vector.broadcast %44 : vector<1x128xf32> to vector<32x128xf32>
    %46 = arith.mulf %36, %45 : vector<32x128xf32>
    %47 = arith.truncf %46 : vector<32x128xf32> to vector<32x128xbf16>
    %c1 = arith.constant 1 : index
    %c0_22 = arith.constant 0 : index
    %c0_23 = arith.constant 0 : index
    %48 = vector.load %arg4[%c1, %c0_22, %c0_23] : memref<2x32x32xbf16, #tpu.memory_space<vmem>>, vector<1x32x32xbf16>
    %49 = vector.shape_cast %48 : vector<1x32x32xbf16> to vector<32x32xbf16>
    %cst_24 = arith.constant dense<0.000000e+00> : vector<32x128xf32>
    %50 = tpu.matmul %49, %47, %cst_24 {dimension_numbers = #tpu.dot_dimension_numbers<[1], [0], [0], [1], [0, 0, 1, 1], [], []>} : vector<32x32xbf16>, vector<32x128xbf16>, vector<32x128xf32> -> vector<32x128xf32>
    %c1_25 = arith.constant 1 : index
    %c0_26 = arith.constant 0 : index
    %c0_27 = arith.constant 0 : index
    %51 = vector.load %arg5[%c1_25, %c0_26, %c0_27] : memref<2x32x1xf32, #tpu.memory_space<vmem>>, vector<1x32x1xf32>
    %52 = vector.shape_cast %51 : vector<1x32x1xf32> to vector<32x1xf32>
    %53 = vector.broadcast %52 : vector<32x1xf32> to vector<32x128xf32>
    %54 = arith.addf %50, %53 : vector<32x128xf32>
    %cst_28 = arith.constant 0.000000e+00 : f32
    %55 = vector.broadcast %cst_28 : f32 to vector<32x128xf32>
    %56 = arith.maximumf %54, %55 : vector<32x128xf32>
    %57 = arith.truncf %56 : vector<32x128xf32> to vector<32x128xbf16>
    %c0_29 = arith.constant 0 : index
    %c0_30 = arith.constant 0 : index
    %58 = vector.load %arg6[%c0_29, %c0_30] : memref<2x32xbf16, #tpu.memory_space<vmem>>, vector<2x32xbf16>
    %cst_31 = arith.constant dense<0.000000e+00> : vector<2x128xf32>
    %59 = tpu.matmul %58, %57, %cst_31 {dimension_numbers = #tpu.dot_dimension_numbers<[1], [0], [0], [1], [0, 0, 1, 1], [], []>} : vector<2x32xbf16>, vector<32x128xbf16>, vector<2x128xf32> -> vector<2x128xf32>
    %c0_32 = arith.constant 0 : index
    %c0_33 = arith.constant 0 : index
    %60 = vector.load %arg7[%c0_32, %c0_33] : memref<2x1xf32, #tpu.memory_space<vmem>>, vector<2x1xf32>
    %61 = vector.broadcast %60 : vector<2x1xf32> to vector<2x128xf32>
    %62 = arith.addf %59, %61 : vector<2x128xf32>
    %63 = vector.extract_strided_slice %62 {offsets = [0, 0], sizes = [1, 128], strides = [1, 1]} : vector<2x128xf32> to vector<1x128xf32>
    %c0_34 = arith.constant 0 : index
    %c0_35 = arith.constant 0 : index
    %64 = vector.load %arg8[%c0_34, %c0_35] : memref<2x128xf32, #tpu.memory_space<vmem>>, vector<1x128xf32>
    tpu.vector_store %arg8[%c0_34, %c0_35], %63 {strides = array<i32>} : memref<2x128xf32, #tpu.memory_space<vmem>>, vector<1x128xf32>,
    %65 = vector.extract_strided_slice %62 {offsets = [1, 0], sizes = [1, 128], strides = [1, 1]} : vector<2x128xf32> to vector<1x128xf32>
    %c0_36 = arith.constant 0 : index
    %c0_37 = arith.constant 0 : index
    %66 = vector.load %arg2[%c0_36, %c0_37] : memref<1x128xf32, #tpu.memory_space<vmem>>, vector<1x128xf32>
    %67 = arith.mulf %65, %66 : vector<1x128xf32>
    %c1_38 = arith.constant 1 : index
    %c0_39 = arith.constant 0 : index
    %68 = vector.load %arg8[%c1_38, %c0_39] : memref<2x128xf32, #tpu.memory_space<vmem>>, vector<1x128xf32>
    tpu.vector_store %arg8[%c1_38, %c0_39], %67 {strides = array<i32>} : memref<2x128xf32, #tpu.memory_space<vmem>>, vector<1x128xf32>,
    return
  }
  func.func @transform_0(%arg0: i32) -> (i32, i32) {
    %c0_i32 = arith.constant 0 : i32
    %c0_i32_0 = arith.constant 0 : i32
    return %c0_i32, %arg0 : i32, i32
  }
  func.func @transform_1(%arg0: i32) -> (i32, i32) {
    %c0_i32 = arith.constant 0 : i32
    %c0_i32_0 = arith.constant 0 : i32
    return %c0_i32, %arg0 : i32, i32
  }
  func.func @transform_2(%arg0: i32) -> (i32, i32) {
    %c0_i32 = arith.constant 0 : i32
    %c0_i32_0 = arith.constant 0 : i32
    %c0_i32_1 = arith.constant 0 : i32
    return %c0_i32, %c0_i32_0 : i32, i32
  }
  func.func @transform_3(%arg0: i32) -> (i32, i32, i32) {
    %c0_i32 = arith.constant 0 : i32
    %c0_i32_0 = arith.constant 0 : i32
    %c0_i32_1 = arith.constant 0 : i32
    %c0_i32_2 = arith.constant 0 : i32
    return %c0_i32, %c0_i32_0, %c0_i32_1 : i32, i32, i32
  }
  func.func @transform_4(%arg0: i32) -> (i32, i32, i32) {
    %c0_i32 = arith.constant 0 : i32
    %c0_i32_0 = arith.constant 0 : i32
    %c0_i32_1 = arith.constant 0 : i32
    %c0_i32_2 = arith.constant 0 : i32
    return %c0_i32, %c0_i32_0, %c0_i32_1 : i32, i32, i32
  }
  func.func @transform_5(%arg0: i32) -> (i32, i32) {
    %c0_i32 = arith.constant 0 : i32
    %c0_i32_0 = arith.constant 0 : i32
    %c0_i32_1 = arith.constant 0 : i32
    return %c0_i32, %c0_i32_0 : i32, i32
  }
  func.func @transform_6(%arg0: i32) -> (i32, i32) {
    %c0_i32 = arith.constant 0 : i32
    %c0_i32_0 = arith.constant 0 : i32
    %c0_i32_1 = arith.constant 0 : i32
    return %c0_i32, %c0_i32_0 : i32, i32
  }
  func.func @transform_7(%arg0: i32) -> (i32, i32) {
    %c0_i32 = arith.constant 0 : i32
    %c0_i32_0 = arith.constant 0 : i32
    return %c0_i32, %arg0 : i32, i32
  }
}

</mosaic_0001>

<bundles_post_ra>
// kernel: tpu_custom_call.1
= control target key start
LH: loop header
LB: loop body
LE: loop exit
PB: predicated region body
PF: predicated region fallthrough
CT: control target
= control target key end

     0   :  { %vm33_vm0 = vcmask 64512   ;;  %s554_s0 = inlined_call_operand.vmem [shape: f32[8,128], index: 0, kind: input, shape index: {}]   ;;  %s555_s1 = inlined_call_operand.vmem [shape: f32[1,128], index: 1, kind: input, shape index: {}]   ;;  %s556_s2 = inlined_call_operand.vmem [shape: f32[32,8], index: 2, kind: input, shape index: {}]   ;;  %s557_s3 = inlined_call_operand.vmem [shape: bf16[2,32,32], index: 3, kind: input, shape index: {}]   ;;  %s558_s4 = inlined_call_operand.vmem [shape: f32[2,32,1], index: 4, kind: input, shape index: {}]   ;;  %s559_s5 = inlined_call_operand.vmem [shape: bf16[2,32], index: 5, kind: input, shape index: {}]   ;;  %s560_s6 = inlined_call_operand.vmem [shape: f32[2,1], index: 6, kind: input, shape index: {}]   ;;  %s561_s7 = inlined_call_operand.hbm [shape: f32[2,128], index: 7, kind: output, shape index: {}]  }
   0x1   :  { %v32_v0 = vld [vmem:[%s554_s0] sm:$0xff] }
   0x2   :  { %v28_v1 = vld [vmem:[%s556_s2] sm:$0xff]  ;;  %61 = vmatpush.msra.mxu0 %v32_v0 }
   0x3   :  { %361 = vmatmul.msk.f32.vlgmr.msra.gmra.mxu0 %vm33_vm0, %v28_v1 }
   0x4   :  { %12 = vsyncpa [#allocation3], 0  ;;  %v29_v2 = vld [vmem:[%s556_s2 + $0x8] sm:$0xff]  ;;  %v30_v3 = vld [vmem:[%s556_s2 + $0x10] sm:$0xff]  ;;  %v437_v7 = vmov 32.0   ;;  %v438_v51 = vmov 0  }
   0x5   :  { %v31_v4 = vld [vmem:[%s556_s2 + $0x18] sm:$0xff]  ;;  %405 = vrcp.f32 %v437_v7  ;;  %v135_v48 = vld [vmem:[%s558_s4] sm:$0xff]  ;;  %v137_v49 = vld [vmem:[%s558_s4 + $0x10] sm:$0xff]  ;;  %401 = vset.pattern.permute.xlu0 %v438_v51  ;;  %402 = vset.pattern.permute.xlu1 %v438_v51  ;;  %vm169_vm5 = vcmask 261120   ;;  %s439_s11 = smov [#allocation2]   ;;  %s352_s15 = sshll.u32 %s561_s7, 4  ;;  %s353_s15 = int_to_ptr.hbm [resolvable:$true] %s352_s15 }
   0x6   :  { %141 = vperm.xlu0 %401, %v135_v48   ;;  %151 = vperm.xlu1 %402, %v137_v49   ;;  %v136_v52 = vld [vmem:[%s558_s4 + $0x8] sm:$0xff]  ;;  %v138_v58 = vld [vmem:[%s558_s4 + $0x18] sm:$0xff]  ;;  %v379_v59 = vld [vmem:[%s558_s4 + $0x20] sm:$0xff]  ;;  %s350_s12 = sshll.u32 %s439_s11, 4  ;;  %s351_s12 = int_to_ptr.vmem [resolvable:$true] %s350_s12 }
   0x7   :  { %403 = vset.pattern.permute.xlu2 %v438_v51  ;;  %v380_v0 = vld [vmem:[%s558_s4 + $0x28] sm:$0xff] }
   0xb   :  { %362 = vmatmul.msk.f32.gmra.mxu0 %vm33_vm0, %v29_v2  ;;  %v406_v9 = vpop.eup %405 }
   0xc   :  { %v89_v13 = vmul.f32 32.0, %v406_v9  ;;  %vm93_vm1 = vweird.f32 %v406_v9 }
   0xe   :  { %v90_v18 = vsub.f32 1.0, %v89_v13  ;;  %146 = vperm.xlu0 %401, %v136_v52   ;;  %156 = vperm.xlu1 %402, %v138_v58   ;;  %v381_v58 = vld [vmem:[%s558_s4 + $0x30] sm:$0xff] }
   0xf   :  { %266 = vperm.xlu2 %403, %v381_v58  }
  0x10   :  { %v91_v21 = vmul.f32 %v406_v9, %v90_v18 }
  0x12   :  { %v92_v24 = vadd.f32 %v406_v9, %v91_v21 }
  0x13   :  { %363 = vmatmul.msk.f32.gmra.mxu0 %vm33_vm0, %v30_v3 }
  0x14   :  { %v495_v27 = vsel %vm93_vm1, %v406_v9, %v92_v24 }
  0x16   :  { %256 = vperm.xlu0 %401, %v379_v59   ;;  %261 = vperm.xlu1 %402, %v380_v0  }
  0x1b   :  { %364 = vmatmul.msk.f32.gmra.mxu0 %vm33_vm0, %v31_v4 }
  0x80   :  { %v63_v5 = vpop.f32.mrf.mxu0 }
  0x81   :  { %v75_v11 = vmax.f32 %v63_v5, 0.0  ;;  %v394_v5 = vld [vmem:[%s557_s3] sm:$0xff] }
  0x88   :  { %v66_v6 = vpop.f32.mrf.mxu0 }
  0x89   :  { %v76_v10 = vmax.f32 %v66_v6, 0.0  ;;  %v395_v6 = vld [vmem:[%s557_s3 + $0x8] sm:$0xff] }
  0x8b   :  { %v79_v14 = vadd.f32 %v76_v10, %v75_v11 }
  0x90   :  { %v69_v8 = vpop.f32.mrf.mxu0 }
  0x91   :  { %v77_v12 = vmax.f32 %v69_v8, 0.0  ;;  %v142_v8 = vpop.permute.xlu0 %141 }
  0x93   :  { %v80_v16 = vadd.f32 %v79_v14, %v77_v12 }
  0x98   :  { %v72_v15 = vpop.f32.mrf.mxu0 }
  0x99   :  { %v78_v17 = vmax.f32 %v72_v15, 0.0 }
  0x9b   :  { %v81_v19 = vadd.f32 %v80_v16, %v78_v17 }
  0x9d   :  { %v82_v20 = vrot.slane %v81_v19, 4 }
  0x9f   :  { %v83_v22 = vadd.f32 %v82_v20, %v81_v19 }
  0xa1   :  { %v84_v23 = vrot.slane %v83_v22, 2 }
  0xa3   :  { %v85_v25 = vadd.f32 %v84_v23, %v83_v22 }
  0xa5   :  { %v86_v26 = vrot.slane %v85_v25, 1 }
  0xa7   :  { %v87_v28 = vadd.f32 %v86_v26, %v85_v25 }
  0xa9   :  { %v95_v29 = vmul.f32 %v495_v27, %v87_v28 }
  0xab   :  { %v96_v30 = vsub.f32 %v75_v11, %v95_v29  ;;  %v97_v31 = vsub.f32 %v76_v10, %v95_v29  ;;  %v98_v32 = vsub.f32 %v77_v12, %v95_v29  ;;  %v99_v33 = vsub.f32 %v78_v17, %v95_v29  ;;  %v152_v10 = vpop.permute.xlu1 %151  ;;  %v147_v11 = vpop.permute.xlu0 %146 }
  0xad   :  { %v100_v34 = vmul.f32 %v96_v30, %v96_v30  ;;  %v101_v35 = vmul.f32 %v97_v31, %v97_v31  ;;  %v102_v36 = vmul.f32 %v98_v32, %v98_v32  ;;  %v103_v38 = vmul.f32 %v99_v33, %v99_v33 }
  0xaf   :  { %v104_v37 = vadd.f32 %v101_v35, %v100_v34 }
  0xb1   :  { %v105_v39 = vadd.f32 %v104_v37, %v102_v36 }
  0xb3   :  { %v106_v40 = vadd.f32 %v105_v39, %v103_v38  ;;  %v157_v19 = vpop.permute.xlu1 %156 }
  0xb5   :  { %v107_v41 = vrot.slane %v106_v40, 4 }
  0xb7   :  { %v108_v42 = vadd.f32 %v107_v41, %v106_v40 }
  0xb9   :  { %v109_v43 = vrot.slane %v108_v42, 2 }
  0xbb   :  { %v110_v44 = vadd.f32 %v109_v43, %v108_v42 }
  0xbd   :  { %v111_v45 = vrot.slane %v110_v44, 1 }
  0xbf   :  { %v112_v46 = vadd.f32 %v111_v45, %v110_v44 }
  0xc1   :  { %v113_v47 = vmul.f32 %v112_v46, %v495_v27 }
  0xc3   :  { %v114_v50 = vadd.f32 1e-05, %v113_v47 }
  0xc5   :  { %407 = vrsqrt.f32 %v114_v50  ;;  %vm121_vm3 = vweird.f32 %v114_v50 }
  0xcb   :  { %v408_v53 = vpop.eup %407 }
  0xcc   :  { %v116_v54 = vmul.f32 %v408_v53, %v114_v50  ;;  %vm122_vm2 = vweird.f32 %v408_v53 }
  0xcd   :  { %vm123_vm4 = vmor %vm121_vm3, %vm122_vm2 }
  0xce   :  { %v117_v55 = vmul.f32 %v408_v53, %v116_v54 }
  0xd0   :  { %v118_v56 = vmul.f32 0.5, %v117_v55 }
  0xd2   :  { %v119_v57 = vsub.f32 1.5, %v118_v56 }
  0xd4   :  { %v120_v60 = vmul.f32 %v408_v53, %v119_v57 }
  0xd6   :  { %v124_v61 = vsel %vm123_vm4, %v408_v53, %v120_v60 }
  0xd7   :  { %v127_v62 = vmul.f32 %v124_v61, %v98_v32  ;;  %v128_v63 = vmul.f32 %v124_v61, %v99_v33  ;;  %v125_v2 = vmul.f32 %v124_v61, %v96_v30  ;;  %v126_v3 = vmul.f32 %v124_v61, %v97_v31 }
  0xd9   :  { %v130_v1 = vpack.c.bf16 %v128_v63, %v127_v62  ;;  %v129_v4 = vpack.c.bf16 %v126_v3, %v125_v2  ;;  %v396_v3 = vld [vmem:[%s557_s3 + $0x10] sm:$0xff] }
  0xdb   :  { %182 = vmatpush.bf16.msra.mxu1 %v130_v1 }
  0xdf   :  { %183 = vmatpush.bf16.msra.mxu1 %v129_v4  ;;  %v316_v4 = vld [vmem:[%s560_s6] sm:$0x3] }
  0xe2   :  { %373 = vmatmul.msk.bf16.vlgmr.msra.gmra.mxu1 %vm169_vm5, %v394_v5  ;;  %v397_v5 = vld [vmem:[%s557_s3 + $0x18] sm:$0xff] }
  0xf2   :  { %374 = vmatmul.msk.bf16.gmra.mxu1 %vm169_vm5, %v395_v6 }
 0x15f   :  { %v185_v7 = vpop.f32.mrf.mxu1 }
 0x160   :  { %v186_v14 = vadd.f32 %v185_v7, %v142_v8  ;;  %v267_v8 = vpop.permute.xlu2 %266 }
 0x162   :  { %v195_v17 = vmax.f32 %v186_v14, 0.0 }
 0x167   :  { %v187_v9 = vpop.f32.mrf.mxu1 }
 0x168   :  { %v188_v13 = vadd.f32 %v187_v9, %v147_v11 }
 0x16a   :  { %v196_v16 = vmax.f32 %v188_v13, 0.0 }
 0x16c   :  { %v199_v21 = vadd.f32 %v196_v16, %v195_v17 }
 0x16f   :  { %v190_v12 = vpop.f32.mrf.mxu1 }
 0x170   :  { %v191_v15 = vadd.f32 %v190_v12, %v152_v10  ;;  %v262_v10 = vpop.permute.xlu1 %261 }
 0x172   :  { %v197_v18 = vmax.f32 %v191_v15, 0.0 }
 0x174   :  { %v200_v23 = vadd.f32 %v199_v21, %v197_v18 }
 0x177   :  { %v192_v20 = vpop.f32.mrf.mxu1 }
 0x178   :  { %v193_v22 = vadd.f32 %v192_v20, %v157_v19 }
 0x17a   :  { %v198_v24 = vmax.f32 %v193_v22, 0.0 }
 0x17c   :  { %v201_v25 = vadd.f32 %v200_v23, %v198_v24 }
 0x17e   :  { %v202_v26 = vrot.slane %v201_v25, 4 }
 0x180   :  { %v203_v28 = vadd.f32 %v202_v26, %v201_v25  ;;  %v404_v25 = vld [vmem:[%s555_s1] ss:$0 sm:$0xff] }
 0x182   :  { %v204_v29 = vrot.slane %v203_v28, 2 }
 0x184   :  { %v205_v30 = vadd.f32 %v204_v29, %v203_v28 }
 0x186   :  { %v206_v31 = vrot.slane %v205_v30, 1 }
 0x188   :  { %v207_v32 = vadd.f32 %v206_v31, %v205_v30 }
 0x18a   :  { %v208_v33 = vmul.f32 %v207_v32, %v495_v27 }
 0x18c   :  { %v209_v34 = vsub.f32 %v195_v17, %v208_v33  ;;  %v210_v35 = vsub.f32 %v196_v16, %v208_v33  ;;  %v211_v36 = vsub.f32 %v197_v18, %v208_v33  ;;  %v212_v37 = vsub.f32 %v198_v24, %v208_v33  ;;  %v257_v16 = vpop.permute.xlu0 %256  ;;  %v315_v24 = vld [vmem:[%s559_s5] sm:$0x1] }
 0x18e   :  { %v213_v38 = vmul.f32 %v209_v34, %v209_v34  ;;  %v214_v39 = vmul.f32 %v210_v35, %v210_v35  ;;  %v215_v40 = vmul.f32 %v211_v36, %v211_v36  ;;  %v216_v42 = vmul.f32 %v212_v37, %v212_v37 }
 0x190   :  { %v217_v41 = vadd.f32 %v214_v39, %v213_v38 }
 0x192   :  { %v218_v43 = vadd.f32 %v217_v41, %v215_v40 }
 0x194   :  { %v219_v44 = vadd.f32 %v218_v43, %v216_v42 }
 0x196   :  { %v220_v45 = vrot.slane %v219_v44, 4 }
 0x198   :  { %v221_v46 = vadd.f32 %v220_v45, %v219_v44 }
 0x19a   :  { %v222_v47 = vrot.slane %v221_v46, 2 }
 0x19c   :  { %v223_v48 = vadd.f32 %v222_v47, %v221_v46 }
 0x19e   :  { %v224_v49 = vrot.slane %v223_v48, 1 }
 0x1a0   :  { %v225_v50 = vadd.f32 %v224_v49, %v223_v48 }
 0x1a2   :  { %v226_v51 = vmul.f32 %v225_v50, %v495_v27  ;;  %v382_v27 = vld [vmem:[%s558_s4 + $0x38] sm:$0xff] }
 0x1a3   :  { %271 = vperm.xlu2 %403, %v382_v27  }
 0x1a4   :  { %v227_v52 = vadd.f32 1e-05, %v226_v51 }
 0x1a6   :  { %409 = vrsqrt.f32 %v227_v52  ;;  %vm234_vm7 = vweird.f32 %v227_v52 }
 0x1ab   :  { %319 = vperm.xlu2 %403, %v316_v4  }
 0x1ac   :  { %v410_v53 = vpop.eup %409 }
 0x1ad   :  { %v229_v54 = vmul.f32 %v410_v53, %v227_v52  ;;  %vm235_vm6 = vweird.f32 %v410_v53 }
 0x1ae   :  { %vm236_vm8 = vmor %vm234_vm7, %vm235_vm6 }
 0x1af   :  { %v230_v55 = vmul.f32 %v410_v53, %v229_v54 }
 0x1b1   :  { %v231_v56 = vmul.f32 0.5, %v230_v55 }
 0x1b3   :  { %v232_v57 = vsub.f32 1.5, %v231_v56 }
 0x1b5   :  { %v233_v59 = vmul.f32 %v410_v53, %v232_v57 }
 0x1b7   :  { %v237_v60 = vsel %vm236_vm8, %v410_v53, %v233_v59 }
 0x1b8   :  { %v240_v61 = vmul.f32 %v237_v60, %v211_v36  ;;  %v241_v62 = vmul.f32 %v237_v60, %v212_v37  ;;  %v238_v0 = vmul.f32 %v237_v60, %v209_v34  ;;  %v239_v1 = vmul.f32 %v237_v60, %v210_v35 }
 0x1ba   :  { %v243_v63 = vpack.c.bf16 %v241_v62, %v240_v61  ;;  %v242_v2 = vpack.c.bf16 %v239_v1, %v238_v0 }
 0x1bc   :  { %296 = vmatpush.bf16.msra.mxu2 %v243_v63 }
 0x1c0   :  { %297 = vmatpush.bf16.msra.mxu2 %v242_v2 }
 0x1c3   :  { %391 = vmatmul.msk.bf16.vlgmr.msra.gmra.mxu2 %vm169_vm5, %v396_v3 }
 0x1d3   :  { %392 = vmatmul.msk.bf16.gmra.mxu2 %vm169_vm5, %v397_v5 }
 0x1fd   :  { %v272_v12 = vpop.permute.xlu2 %271 }
 0x205   :  { %v320_v26 = vpop.permute.xlu2 %319 }
 0x246   :  { %v299_v6 = vpop.f32.mrf.mxu2 }
 0x247   :  { %v300_v17 = vadd.f32 %v299_v6, %v257_v16 }
 0x249   :  { %v309_v22 = vmax.f32 %v300_v17, 0.0 }
 0x24e   :  { %v301_v7 = vpop.f32.mrf.mxu2 }
 0x24f   :  { %v302_v14 = vadd.f32 %v301_v7, %v262_v10 }
 0x251   :  { %v310_v20 = vmax.f32 %v302_v14, 0.0 }
 0x253   :  { %v313_v23 = vpack.c.bf16 %v310_v20, %v309_v22 }
 0x256   :  { %v304_v9 = vpop.f32.mrf.mxu2 }
 0x257   :  { %v305_v11 = vadd.f32 %v304_v9, %v267_v8 }
 0x259   :  { %v311_v18 = vmax.f32 %v305_v11, 0.0 }
 0x25e   :  { %v306_v13 = vpop.f32.mrf.mxu2 }
 0x25f   :  { %v307_v15 = vadd.f32 %v306_v13, %v272_v12 }
 0x261   :  { %v312_v19 = vmax.f32 %v307_v15, 0.0 }
 0x263   :  { %v314_v21 = vpack.c.bf16 %v312_v19, %v311_v18 }
 0x265   :  { %331 = vmatpush.bf16.msra.mxu3 %v314_v21 }
 0x269   :  { %332 = vmatpush.bf16.msra.mxu3 %v313_v23 }
 0x26c   :  { %393 = vmatmul.msk.bf16.vlgmr.msra.gmra.mxu3 %vm169_vm5, %v315_v24 }
 0x2ef   :  { %v334_v28 = vpop.f32.mrf.mxu3 }
 0x2f0   :  { %v335_v29 = vadd.f32 %v334_v28, %v320_v26 }
 0x2f2   :  { %338 = vst [vmem:[#allocation2] sm:$0x1] %v335_v29  ;;  %v343_v30 = vmul.f32 %v404_v25, %v335_v29 }
 0x2f4   :  { %344 = vst [vmem:[#allocation2] sm:$0x2] %v343_v30 }
 0x2f5   :  { %355 = dma.vmem_to_hbm [thread:$0]  %s351_s12, 32, %s353_s15, [#allocation3]  }
 0x2f7   :  { %v336_v31 = vpop.f32.mrf.mxu3 }
 0x2f8   :  { %435 = dma.done.wait [#allocation3], 32  }
 0x2f9   :  { %436 = vsyncadd [#allocation3], 4294967264 }
 0x2fa   :  { %360 = vsyncpa [#allocation3], 1 }

</bundles_post_ra>
